<compile_context>
chip_gen: v7x
topology: tpu7x:2x2x1
jax: 0.10.0
libtpu: 0.0.40
codegen_flags: <defaults>
</compile_context>

<pallas_src>
import jax
import jax.numpy as jnp
from jax.experimental import pallas as pl
from jax.experimental.pallas import tpu as pltpu

_LANE = 128


def _avg_consensus_kernel(x_ref, o_ref):
    # x_ref: (BN, T, TC) VMEM tile; o_ref: (BN, TC)
    inv_t = 1.0 / x_ref.shape[1]                     # compile-time constant
    acc = jnp.sum(x_ref[...].astype(jnp.float32), axis=1)   # single dense load + XLU reduce
    o_ref[...] = (acc * inv_t).astype(o_ref.dtype)


def _round_up(x, m):
    return (x + m - 1) // m * m


def _pick_blocks(N, T, C, dtype, *, budget=12 << 20, min_steps=4, min_block_bytes=2 << 20):
    """Choose (bn, tc) and a vmem_limit for pallas_call.

    All budget math uses the physically padded tile footprint: the last two
    block dims pad to (sublane_tile, 128) where sublane_tile is 8 for f32,
    16 for bf16, 32 for int8/fp8, so sub-32-bit dtypes cannot silently
    overshoot VMEM.
    """
    itemsize = jnp.dtype(dtype).itemsize
    sub = max(8, 32 // max(1, itemsize))             # minimum sublane tile for dtype

    def in_bytes(bn, tc):                            # padded (bn, T, tc) input block
        return bn * _round_up(T, sub) * _round_up(tc, _LANE) * itemsize

    def out_bytes(bn, tc):                           # padded (bn, tc) output block
        return _round_up(bn, sub) * _round_up(tc, _LANE) * itemsize

    bn_min = N if N < 8 else 8

    # Feature (lane) block: prefer the full C extent (one contiguous HBM region
    # per batch row, unmasked lane-dense stores, fewer grid steps).  Only split
    # C -- into 128-multiples, ragged last block handled by cdiv -- when a
    # full-C block does not fit the budget even at the minimum batch block.
    if C <= _LANE or in_bytes(bn_min, C) <= budget:
        tc = C
    else:
        max_tc = (C // _LANE) * _LANE
        tc = (budget // (bn_min * _round_up(T, sub) * itemsize)) // _LANE * _LANE
        tc = int(max(_LANE, min(tc, max_tc)))

    # Batch block: full N when N < 8 (legal full-extent block), otherwise a
    # multiple of 8 grown while the padded input block stays within the budget.
    if N < 8:
        bn = N
    else:
        bn = 8
        while bn * 2 <= N and in_bytes(bn * 2, tc) <= budget:
            bn *= 2

    # Megacore / pipeline balance: aim for >= min_steps grid steps (>= 2 per
    # TensorCore on v7x), but never shrink a block below min_block_bytes so the
    # ~0.35 us per-step overhead stays amortized; tiny problems keep one block.
    def steps(b, t):
        return pl.cdiv(N, b) * pl.cdiv(C, t)

    while steps(bn, tc) < min_steps:
        if (bn >= 16 and (bn // 2) % 8 == 0
                and in_bytes(bn // 2, tc) >= min_block_bytes
                and pl.cdiv(N, bn // 2) > pl.cdiv(N, bn)):
            bn //= 2
            continue
        new_tc = max(_LANE, (tc // 2) // _LANE * _LANE)
        if (new_tc < tc and in_bytes(bn, new_tc) >= min_block_bytes
                and pl.cdiv(C, new_tc) > pl.cdiv(C, tc)):
            tc = new_tc
            continue
        break

    # VMEM limit: double-buffered in+out blocks (padded) plus slack, bounded so
    # it never claims more than ~48 MiB (safe on v7x's 64 MiB per-TC VMEM).
    vmem = 2 * (in_bytes(bn, tc) + out_bytes(bn, tc)) + (4 << 20)
    vmem = int(min(max(vmem, 8 << 20), 48 << 20))
    return int(bn), int(tc), vmem


def segment_consensus(x, consensus_type="avg", dim=1, *, min_pallas_elements=1 << 20):
    """Pallas implementation of SegmentConsensus.forward (incl. the trailing .squeeze(1))."""
    if consensus_type == "identity":
        # torch: output = input; return output.squeeze(1)
        return jnp.squeeze(x, axis=1) if x.shape[1] == 1 else x
    if consensus_type != "avg":
        # PyTorch reference would return None and then fail on .squeeze(1); raise clearly.
        raise ValueError(f"unsupported consensus_type: {consensus_type!r}")

    assert dim == 1, "kernel implemented for the module default dim=1"
    if not jnp.issubdtype(x.dtype, jnp.floating):
        raise TypeError("avg consensus expects a floating-point input (like torch.mean)")

    N, T, C = x.shape

    # Tiny problems: pallas_call launch + per-step overhead exceeds the entire
    # memory traffic; let XLA fuse a plain reduction instead.
    if N * T * C < min_pallas_elements:
        return jnp.mean(x, axis=1)

    bn, tc, vmem_bytes = _pick_blocks(N, T, C, x.dtype)
    grid = (pl.cdiv(N, bn), pl.cdiv(C, tc))

    cost = pl.CostEstimate(
        flops=N * (T - 1) * C + N * C,               # (T-1) adds + 1 scale per output element
        transcendentals=0,
        bytes_accessed=(N * T * C + N * C) * x.dtype.itemsize,
    )

    # Note: on v7x a third in-flight input buffer (pipeline_mode=pl.Buffered(3))
    # can hide DMA turnaround for the shortest steps; left at the default depth
    # here since the win is low-single-digit % and VMEM-budget dependent.
    return pl.pallas_call(
        _avg_consensus_kernel,
        out_shape=jax.ShapeDtypeStruct((N, C), x.dtype),
        grid_spec=pl.GridSpec(
            grid=grid,
            in_specs=[pl.BlockSpec((bn, T, tc), lambda i, j: (i, 0, j))],
            out_specs=pl.BlockSpec((bn, tc), lambda i, j: (i, j)),
        ),
        compiler_params=pltpu.CompilerParams(
            dimension_semantics=("parallel", "parallel"),
            vmem_limit_bytes=vmem_bytes,
        ),
        cost_estimate=cost,
    )(x)


if __name__ == "__main__":
    key = jax.random.PRNGKey(0)
    k0, k1, k2 = jax.random.split(key, 3)

    # Small demo shape consistent with TSN: batch=2, segments=8, features=32.
    N, T, C = 2, 8, 32
    x = jax.random.normal(k0, (N, T, C), dtype=jnp.float32)

    # Force the Pallas path (min_pallas_elements=0) so the kernel is exercised.
    y = jax.block_until_ready(segment_consensus(x, "avg", min_pallas_elements=0))
    ref = jnp.mean(x, axis=1)
    assert y.shape == (N, C)
    assert jnp.allclose(y, ref, atol=1e-5, rtol=1e-5)

    # Shape exercising a 2-D grid with a partial batch block (20 rows, bn=16).
    N2, T2, C2 = 20, 8, 384
    x2 = jax.random.normal(k1, (N2, T2, C2), dtype=jnp.float32)
    y2 = jax.block_until_ready(segment_consensus(x2, "avg", min_pallas_elements=0))
    assert y2.shape == (N2, C2)
    assert jnp.allclose(y2, jnp.mean(x2, axis=1), atol=1e-5, rtol=1e-5)

    # bf16 path: exercises sub-32-bit sublane-padding accounting + f32 accumulate.
    N3, T3, C3 = 8, 8, 256
    x3 = jax.random.normal(k2, (N3, T3, C3), dtype=jnp.float32).astype(jnp.bfloat16)
    y3 = jax.block_until_ready(segment_consensus(x3, "avg", min_pallas_elements=0))
    ref3 = jnp.mean(x3.astype(jnp.float32), axis=1)
    assert y3.shape == (N3, C3)
    assert jnp.allclose(y3.astype(jnp.float32), ref3, atol=2e-2, rtol=2e-2)

    # Block-picker robustness (no device memory needed): huge unaligned C must
    # stay within the per-block budget and the reported vmem limit.
    bn_t, tc_t, vmem_t = _pick_blocks(4, 8, 500_000, jnp.float32)
    assert tc_t % 128 == 0 and vmem_t <= 48 << 20

    # 'identity' path (pure passthrough / squeeze semantics; no kernel needed).
    y_id = segment_consensus(x, "identity")
    jax.block_until_ready(y_id)
    assert y_id.shape == x.shape

    print("KERNEL_OK")
</pallas_src>

<mosaic_0001>
module attributes {stable_mosaic.version = 11 : i64} {
  func.func @_avg_consensus_kernel(%arg0: i32, %arg1: i32, %arg2: memref<2x8x32xf32, #tpu.memory_space<vmem>>, %arg3: memref<2x32xf32, #tpu.memory_space<vmem>>) attributes {dimension_semantics = [#tpu.dimension_semantics<parallel>, #tpu.dimension_semantics<parallel>], iteration_bounds = array<i64: 1, 1>, scalar_prefetch = 0 : i64, scratch_operands = 0 : i64, tpu.core_type = #tpu.core_type<tc>, window_params = [{transform_indices = @transform_0, window_bounds = array<i64: 2, 8, 32>}, {transform_indices = @transform_1, window_bounds = array<i64: 2, 32>}]} {
    %c0 = arith.constant 0 : index
    %c0_0 = arith.constant 0 : index
    %c0_1 = arith.constant 0 : index
    %0 = vector.load %arg2[%c0, %c0_0, %c0_1] : memref<2x8x32xf32, #tpu.memory_space<vmem>>, vector<2x8x32xf32>
    %cst = arith.constant dense<0.000000e+00> : vector<2x32xf32>
    %1 = vector.multi_reduction <add>, %0, %cst [1] : vector<2x8x32xf32> to vector<2x32xf32>
    %cst_2 = arith.constant 1.250000e-01 : f32
    %2 = vector.broadcast %cst_2 : f32 to vector<2x32xf32>
    %3 = arith.mulf %1, %2 : vector<2x32xf32>
    %c0_3 = arith.constant 0 : index
    %c0_4 = arith.constant 0 : index
    %4 = vector.load %arg3[%c0_3, %c0_4] : memref<2x32xf32, #tpu.memory_space<vmem>>, vector<2x32xf32>
    tpu.vector_store %arg3[%c0_3, %c0_4], %3 {strides = array<i32>} : memref<2x32xf32, #tpu.memory_space<vmem>>, vector<2x32xf32>,
    return
  }
  func.func @transform_0(%arg0: i32, %arg1: i32) -> (i32, i32, i32) {
    %c0_i32 = arith.constant 0 : i32
    %c0_i32_0 = arith.constant 0 : i32
    return %arg0, %c0_i32, %arg1 : i32, i32, i32
  }
  func.func @transform_1(%arg0: i32, %arg1: i32) -> (i32, i32) {
    %c0_i32 = arith.constant 0 : i32
    return %arg0, %arg1 : i32, i32
  }
}

</mosaic_0001>

<bundles_post_ra>
// kernel: tpu_custom_call.1
= control target key start
LH: loop header
LB: loop body
LE: loop exit
PB: predicated region body
PF: predicated region fallthrough
CT: control target
= control target key end

     0   :  { %6 = vsyncpa [#allocation3], 0  ;;  %s154_s0 = inlined_call_operand.hbm [shape: f32[2,8,32], index: 0, kind: input, shape index: {}]   ;;  %s155_s1 = inlined_call_operand.hbm [shape: f32[2,32], index: 1, kind: output, shape index: {}]  }
   0x1   :  { %7 = vsyncpa [#allocation4], 0  ;;  %s116_s6 = smov [#allocation2]   ;;  %s68_s10 = scalar_lea.hbm %s154_s0, 256 }
   0x2   :  { %s13_s7 = sshll.u32 %s116_s6, 4  ;;  %p69_p0 = scmp.ne.s32.totalorder %s154_s0, %s68_s10  ;;  %s14_s7 = int_to_ptr.vmem [resolvable:$true] %s13_s7 }
   0x3   :  { %p72_p1 = scmp.lt.u32.totalorder %s68_s10, %s154_s0 }
   0x5   :  { %p74_p2 = pnand %p72_p1, %p69_p0 }
   0x7   :  { %77 = shalt.err (!%p74_p2)
}
   0x8   :  { %s78_s15 = scalar_lea.vmem %s14_s7, 256  ;;  %p83_p4 = scmp.lt.s32.totalorder %s14_s7, %s14_s7 }
   0x9   :  { %p79_p3 = scmp.ne.s32.totalorder %s14_s7, %s78_s15  ;;  %p84_p5 = scmp.lt.s32.totalorder %s78_s15, %s78_s15 }
   0xb   :  { %p85_p6 = por %p84_p5, %p83_p4 }
   0xd   :  { %p86_p7 = pnand %p85_p6, %p79_p3 }
   0xf   :  { %89 = shalt.err (!%p86_p7)
}
  0x10   :  { %s117_s16 = smov 128   ;;  %s118_s17 = smov 8  }
  0x11   :  { %19 = dma.hbm_to_vmem [thread:$0]  %s154_s0, 256, %s14_s7, [#allocation3], %s117_s16, %s117_s16, %s118_s17  }
  0x12   :  { %112 = dma.done.wait [#allocation3], 256  }
  0x13   :  { %113 = vsyncadd [#allocation3], 4294967040  ;;  %vm25_vm0 = vcmask 261120   ;;  %v23_v0 = vld [vmem:[#allocation2] sm:$0xff]  ;;  %v24_v1 = vld [vmem:[#allocation2 + $0x8] sm:$0xff]  ;;  %s119_s0 = smov [#allocation5]  }
  0x14   :  { %v26_v2 = vsel %vm25_vm0, %v23_v0, 0.0  ;;  %v33_v3 = vsel %vm25_vm0, %v24_v1, 0.0  ;;  %s55_s20 = sshll.u32 %s119_s0, 4  ;;  %vm44_vm1 = vcmask 1041409   ;;  %vm47_vm2 = vcmask 254976   ;;  %s56_s20 = int_to_ptr.vmem [resolvable:$true] %s55_s20 }
  0x15   :  { %v27_v4 = vrot.slane %v26_v2, 4  ;;  %v34_v5 = vrot.slane %v33_v3, 4  ;;  %s90_s21 = scalar_lea.vmem %s56_s20, 32  ;;  %p95_p9 = scmp.lt.s32.totalorder %s56_s20, %s56_s20 }
  0x16   :  { %p91_p8 = scmp.ne.s32.totalorder %s56_s20, %s90_s21  ;;  %p96_p10 = scmp.lt.s32.totalorder %s90_s21, %s90_s21 }
  0x17   :  { %v28_v6 = vadd.f32 %v27_v4, %v26_v2  ;;  %v35_v7 = vadd.f32 %v34_v5, %v33_v3 }
  0x18   :  { %p97_p11 = por %p96_p10, %p95_p9 }
  0x19   :  { %v29_v8 = vrot.slane %v28_v6, 2  ;;  %v36_v9 = vrot.slane %v35_v7, 2 }
  0x1a   :  { %p98_p12 = pnand %p97_p11, %p91_p8 }
  0x1b   :  { %v30_v10 = vadd.f32 %v29_v8, %v28_v6  ;;  %v37_v11 = vadd.f32 %v36_v9, %v35_v7 }
  0x1d   :  { %v31_v12 = vrot.slane %v30_v10, 1  ;;  %v38_v13 = vrot.slane %v37_v11, 1 }
  0x1f   :  { %v32_v14 = vadd.f32 %v31_v12, %v30_v10  ;;  %v39_v15 = vadd.f32 %v38_v13, %v37_v11 }
  0x21   :  { %v40_v16 = vmul.f32 0.125, %v32_v14  ;;  %v41_v17 = vmul.f32 0.125, %v39_v15 }
  0x23   :  { %v45_v18 = vsel %vm44_vm1, %v41_v17, %v40_v16 }
  0x24   :  { %48 = vst.msk [vmem:[#allocation5] sm:$0x3] %vm47_vm2, %v45_v18 }
  0x25   :  { %101 = shalt.err (!%p98_p12)
}
  0x26   :  { %s102_s24 = scalar_lea.hbm %s155_s1, 32 }
  0x27   :  { %p103_p13 = scmp.ne.s32.totalorder %s155_s1, %s102_s24  ;;  %p106_p0 = scmp.lt.u32.totalorder %s102_s24, %s155_s1 }
  0x29   :  { %p108_p1 = pnand %p106_p0, %p103_p13 }
  0x2b   :  { %111 = shalt.err (!%p108_p1)
}
  0x2c   :  { %58 = dma.vmem_to_hbm [thread:$0]  %s56_s20, 32, %s155_s1, [#allocation4]  }
  0x2d   :  { %114 = dma.done.wait [#allocation4], 32  }
  0x2e   :  { %115 = vsyncadd [#allocation4], 4294967264 }
  0x2f   :  { %62 = vsyncpa [#allocation3], 1 }
  0x30   :  { %63 = vsyncpa [#allocation4], 1 }

</bundles_post_ra>
